<compile_context>
chip_gen: v5e
topology: v5e:2x2
jax: 0.10.0
libtpu: 0.0.40
codegen_flags: <defaults>
</compile_context>

<pallas_src>
import jax
import jax.numpy as jnp
from jax.experimental import pallas as pl
from jax.experimental.pallas import tpu as pltpu


OUT_PAD = 128  # lane-dense padded output width (true out_dim columns come first)


def mlp_kernel(x_ref, w1_ref, b1_ref, w2_ref, b2_ref, w3_ref, b3_ref, o_ref):
    # One batch tile per grid step; weights/biases are VMEM-resident across steps.
    x = x_ref[...]
    h1 = jnp.dot(x, w1_ref[...], preferred_element_type=jnp.float32) + b1_ref[...]
    h1 = jnp.maximum(h1, 0.0)                      # ReLU
    h2 = jnp.dot(h1, w2_ref[...], preferred_element_type=jnp.float32) + b2_ref[...]
    h2 = jnp.maximum(h2, 0.0)                      # ReLU
    out = jnp.dot(h2, w3_ref[...], preferred_element_type=jnp.float32) + b3_ref[...]
    o_ref[...] = out.astype(o_ref.dtype)           # full 128-lane unmasked store


def _round_up(n, m):
    return ((n + m - 1) // m) * m


def mlp_forward(x, params, *, block_b=256):
    """Run the MLP forward pass via pallas_call.

    x:      [B, inp_dim] float32
    params: dict with w1 [inp,hid], b1 [1,hid], w2 [hid,hid], b2 [1,hid],
            w3 [hid,out_dim], b3 [1,out_dim]
    """
    w1, b1, w2, b2, w3, b3 = (params[k] for k in ("w1", "b1", "w2", "b2", "w3", "b3"))
    B, inp_dim = x.shape
    hid = w1.shape[1]
    out_dim = w3.shape[1]

    # Zero-pad the final layer to 128 lanes so the output store is lane-dense.
    w3p = jnp.zeros((hid, OUT_PAD), w3.dtype).at[:, :out_dim].set(w3)
    b3p = jnp.zeros((1, OUT_PAD), b3.dtype).at[:, :out_dim].set(b3)

    # Batch tile: multiple of 8 (f32 sublane). For small B just round B up to 8.
    tb = block_b if B >= block_b else _round_up(B, 8)
    b_pad = _round_up(B, tb)
    if b_pad != B:
        x = jnp.pad(x, ((0, b_pad - B), (0, 0)))
    grid = (b_pad // tb,)

    out = pl.pallas_call(
        mlp_kernel,
        out_shape=jax.ShapeDtypeStruct((b_pad, OUT_PAD), jnp.float32),
        grid_spec=pltpu.PrefetchScalarGridSpec(
            num_scalar_prefetch=0,
            grid=grid,
            in_specs=[
                pl.BlockSpec((tb, inp_dim), lambda i: (i, 0)),        # x: batch-tiled
                pl.BlockSpec((inp_dim, hid), lambda i: (0, 0)),       # w1: resident
                pl.BlockSpec((1, hid), lambda i: (0, 0)),             # b1: resident
                pl.BlockSpec((hid, hid), lambda i: (0, 0)),           # w2: resident
                pl.BlockSpec((1, hid), lambda i: (0, 0)),             # b2: resident
                pl.BlockSpec((hid, OUT_PAD), lambda i: (0, 0)),       # w3 (padded)
                pl.BlockSpec((1, OUT_PAD), lambda i: (0, 0)),         # b3 (padded)
            ],
            out_specs=pl.BlockSpec((tb, OUT_PAD), lambda i: (i, 0)),
        ),
        compiler_params=pltpu.CompilerParams(
            dimension_semantics=("parallel",),   # shard batch grid across TCs (v7x megacore)
        ),
    )(x, w1, b1, w2, b2, w3p, b3p)

    # Strip batch padding and the lane padding of the final layer.
    return out[:B, :out_dim]


def init_params(key, inp_dim, hid=32, out_dim=2):
    """Deterministic init mimicking PyTorch nn.Linear default (uniform +/- 1/sqrt(fan_in))."""
    ks = jax.random.split(key, 6)

    def linear(kw, kb, fan_in, fan_out):
        bound = 1.0 / jnp.sqrt(fan_in)
        w = jax.random.uniform(kw, (fan_in, fan_out), jnp.float32, -bound, bound)
        b = jax.random.uniform(kb, (1, fan_out), jnp.float32, -bound, bound)
        return w, b

    w1, b1 = linear(ks[0], ks[1], inp_dim, hid)
    w2, b2 = linear(ks[2], ks[3], hid, hid)
    w3, b3 = linear(ks[4], ks[5], hid, out_dim)
    return dict(w1=w1, b1=b1, w2=w2, b2=b2, w3=w3, b3=b3)


def mlp_reference(x, p):
    h1 = jnp.maximum(x @ p["w1"] + p["b1"], 0.0)
    h2 = jnp.maximum(h1 @ p["w2"] + p["b2"], 0.0)
    return h2 @ p["w3"] + p["b3"]


if __name__ == "__main__":
    key = jax.random.PRNGKey(0)
    k_x1, k_x2, k_p = jax.random.split(key, 3)

    inp_dim, hid, out_dim = 16, 32, 2
    params = init_params(k_p, inp_dim, hid=hid, out_dim=out_dim)

    # Case 1: batch that is a clean multiple of 8 (exercises the batch grid path).
    x1 = jax.random.normal(k_x1, (64, inp_dim), jnp.float32)
    out1 = jax.block_until_ready(mlp_forward(x1, params))
    ref1 = mlp_reference(x1, params)
    assert out1.shape == (64, out_dim)
    assert jnp.allclose(out1, ref1, atol=1e-5, rtol=1e-5), "mismatch (B=64)"

    # Case 2: ragged batch (exercises the zero-pad + slice path).
    x2 = jax.random.normal(k_x2, (19, inp_dim), jnp.float32)
    out2 = jax.block_until_ready(mlp_forward(x2, params))
    ref2 = mlp_reference(x2, params)
    assert out2.shape == (19, out_dim)
    assert jnp.allclose(out2, ref2, atol=1e-5, rtol=1e-5), "mismatch (B=19)"

    print("KERNEL_OK")
</pallas_src>

<mosaic_0001>
module attributes {stable_mosaic.version = 11 : i64} {
  func.func @mlp_kernel(%arg0: i32, %arg1: memref<64x16xf32, #tpu.memory_space<vmem>>, %arg2: memref<16x32xf32, #tpu.memory_space<vmem>>, %arg3: memref<1x32xf32, #tpu.memory_space<vmem>>, %arg4: memref<32x32xf32, #tpu.memory_space<vmem>>, %arg5: memref<1x32xf32, #tpu.memory_space<vmem>>, %arg6: memref<32x128xf32, #tpu.memory_space<vmem>>, %arg7: memref<1x128xf32, #tpu.memory_space<vmem>>, %arg8: memref<64x128xf32, #tpu.memory_space<vmem>>) attributes {dimension_semantics = [#tpu.dimension_semantics<parallel>], iteration_bounds = array<i64: 1>, scalar_prefetch = 0 : i64, scratch_operands = 0 : i64, tpu.core_type = #tpu.core_type<tc>, window_params = [{transform_indices = @transform_0, window_bounds = array<i64: 64, 16>}, {pipeline_mode = #tpu.pipeline_mode<synchronous>, transform_indices = @transform_1, window_bounds = array<i64: 16, 32>}, {pipeline_mode = #tpu.pipeline_mode<synchronous>, transform_indices = @transform_2, window_bounds = array<i64: 1, 32>}, {pipeline_mode = #tpu.pipeline_mode<synchronous>, transform_indices = @transform_3, window_bounds = array<i64: 32, 32>}, {pipeline_mode = #tpu.pipeline_mode<synchronous>, transform_indices = @transform_4, window_bounds = array<i64: 1, 32>}, {pipeline_mode = #tpu.pipeline_mode<synchronous>, transform_indices = @transform_5, window_bounds = array<i64: 32, 128>}, {pipeline_mode = #tpu.pipeline_mode<synchronous>, transform_indices = @transform_6, window_bounds = array<i64: 1, 128>}, {transform_indices = @transform_7, window_bounds = array<i64: 64, 128>}]} {
    %c0 = arith.constant 0 : index
    %c0_0 = arith.constant 0 : index
    %0 = vector.load %arg1[%c0, %c0_0] : memref<64x16xf32, #tpu.memory_space<vmem>>, vector<64x16xf32>
    %c0_1 = arith.constant 0 : index
    %c0_2 = arith.constant 0 : index
    %1 = vector.load %arg2[%c0_1, %c0_2] : memref<16x32xf32, #tpu.memory_space<vmem>>, vector<16x32xf32>
    %cst = arith.constant dense<0.000000e+00> : vector<64x32xf32>
    %2 = tpu.matmul %0, %1, %cst {dimension_numbers = #tpu.dot_dimension_numbers<[1], [0], [0], [1], [0, 0, 1, 1], [], []>} : vector<64x16xf32>, vector<16x32xf32>, vector<64x32xf32> -> vector<64x32xf32>
    %c0_3 = arith.constant 0 : index
    %c0_4 = arith.constant 0 : index
    %3 = vector.load %arg3[%c0_3, %c0_4] : memref<1x32xf32, #tpu.memory_space<vmem>>, vector<1x32xf32>
    %4 = vector.broadcast %3 : vector<1x32xf32> to vector<64x32xf32>
    %5 = arith.addf %2, %4 : vector<64x32xf32>
    %cst_5 = arith.constant 0.000000e+00 : f32
    %6 = vector.broadcast %cst_5 : f32 to vector<64x32xf32>
    %7 = arith.maximumf %5, %6 : vector<64x32xf32>
    %c0_6 = arith.constant 0 : index
    %c0_7 = arith.constant 0 : index
    %8 = vector.load %arg4[%c0_6, %c0_7] : memref<32x32xf32, #tpu.memory_space<vmem>>, vector<32x32xf32>
    %cst_8 = arith.constant dense<0.000000e+00> : vector<64x32xf32>
    %9 = tpu.matmul %7, %8, %cst_8 {dimension_numbers = #tpu.dot_dimension_numbers<[1], [0], [0], [1], [0, 0, 1, 1], [], []>} : vector<64x32xf32>, vector<32x32xf32>, vector<64x32xf32> -> vector<64x32xf32>
    %c0_9 = arith.constant 0 : index
    %c0_10 = arith.constant 0 : index
    %10 = vector.load %arg5[%c0_9, %c0_10] : memref<1x32xf32, #tpu.memory_space<vmem>>, vector<1x32xf32>
    %11 = vector.broadcast %10 : vector<1x32xf32> to vector<64x32xf32>
    %12 = arith.addf %9, %11 : vector<64x32xf32>
    %cst_11 = arith.constant 0.000000e+00 : f32
    %13 = vector.broadcast %cst_11 : f32 to vector<64x32xf32>
    %14 = arith.maximumf %12, %13 : vector<64x32xf32>
    %c0_12 = arith.constant 0 : index
    %c0_13 = arith.constant 0 : index
    %15 = vector.load %arg6[%c0_12, %c0_13] : memref<32x128xf32, #tpu.memory_space<vmem>>, vector<32x128xf32>
    %cst_14 = arith.constant dense<0.000000e+00> : vector<64x128xf32>
    %16 = tpu.matmul %14, %15, %cst_14 {dimension_numbers = #tpu.dot_dimension_numbers<[1], [0], [0], [1], [0, 0, 1, 1], [], []>} : vector<64x32xf32>, vector<32x128xf32>, vector<64x128xf32> -> vector<64x128xf32>
    %c0_15 = arith.constant 0 : index
    %c0_16 = arith.constant 0 : index
    %17 = vector.load %arg7[%c0_15, %c0_16] : memref<1x128xf32, #tpu.memory_space<vmem>>, vector<1x128xf32>
    %18 = vector.broadcast %17 : vector<1x128xf32> to vector<64x128xf32>
    %19 = arith.addf %16, %18 : vector<64x128xf32>
    %c0_17 = arith.constant 0 : index
    %c0_18 = arith.constant 0 : index
    %20 = vector.load %arg8[%c0_17, %c0_18] : memref<64x128xf32, #tpu.memory_space<vmem>>, vector<64x128xf32>
    tpu.vector_store %arg8[%c0_17, %c0_18], %19 {strides = array<i32>} : memref<64x128xf32, #tpu.memory_space<vmem>>, vector<64x128xf32>,
    return
  }
  func.func @transform_0(%arg0: i32) -> (i32, i32) {
    %c0_i32 = arith.constant 0 : i32
    %c0_i32_0 = arith.constant 0 : i32
    return %arg0, %c0_i32 : i32, i32
  }
  func.func @transform_1(%arg0: i32) -> (i32, i32) {
    %c0_i32 = arith.constant 0 : i32
    %c0_i32_0 = arith.constant 0 : i32
    %c0_i32_1 = arith.constant 0 : i32
    return %c0_i32, %c0_i32_0 : i32, i32
  }
  func.func @transform_2(%arg0: i32) -> (i32, i32) {
    %c0_i32 = arith.constant 0 : i32
    %c0_i32_0 = arith.constant 0 : i32
    %c0_i32_1 = arith.constant 0 : i32
    return %c0_i32, %c0_i32_0 : i32, i32
  }
  func.func @transform_3(%arg0: i32) -> (i32, i32) {
    %c0_i32 = arith.constant 0 : i32
    %c0_i32_0 = arith.constant 0 : i32
    %c0_i32_1 = arith.constant 0 : i32
    return %c0_i32, %c0_i32_0 : i32, i32
  }
  func.func @transform_4(%arg0: i32) -> (i32, i32) {
    %c0_i32 = arith.constant 0 : i32
    %c0_i32_0 = arith.constant 0 : i32
    %c0_i32_1 = arith.constant 0 : i32
    return %c0_i32, %c0_i32_0 : i32, i32
  }
  func.func @transform_5(%arg0: i32) -> (i32, i32) {
    %c0_i32 = arith.constant 0 : i32
    %c0_i32_0 = arith.constant 0 : i32
    %c0_i32_1 = arith.constant 0 : i32
    return %c0_i32, %c0_i32_0 : i32, i32
  }
  func.func @transform_6(%arg0: i32) -> (i32, i32) {
    %c0_i32 = arith.constant 0 : i32
    %c0_i32_0 = arith.constant 0 : i32
    %c0_i32_1 = arith.constant 0 : i32
    return %c0_i32, %c0_i32_0 : i32, i32
  }
  func.func @transform_7(%arg0: i32) -> (i32, i32) {
    %c0_i32 = arith.constant 0 : i32
    %c0_i32_0 = arith.constant 0 : i32
    return %arg0, %c0_i32 : i32, i32
  }
}

</mosaic_0001>

<bundles_post_ra>
// kernel: tpu_custom_call.1
= control target key start
LH: loop header
LB: loop body
LE: loop exit
PB: predicated region body
PF: predicated region fallthrough
CT: control target
= control target key end

     0   :  { %vm41_vm0 = vcmask 130048   ;;  %s495_s0 = inlined_call_operand.vmem [shape: f32[64,16], index: 0, kind: input, shape index: {}]   ;;  %s496_s1 = inlined_call_operand.vmem [shape: f32[16,32], index: 1, kind: input, shape index: {}]   ;;  %s497_s2 = inlined_call_operand.vmem [shape: f32[1,32], index: 2, kind: input, shape index: {}]   ;;  %s498_s3 = inlined_call_operand.vmem [shape: f32[32,32], index: 3, kind: input, shape index: {}]   ;;  %s499_s4 = inlined_call_operand.vmem [shape: f32[1,32], index: 4, kind: input, shape index: {}]   ;;  %s500_s5 = inlined_call_operand.vmem [shape: f32[32,128], index: 5, kind: input, shape index: {}]   ;;  %s501_s6 = inlined_call_operand.vmem [shape: f32[1,128], index: 6, kind: input, shape index: {}]   ;;  %s502_s7 = inlined_call_operand.hbm [shape: f32[64,128], index: 7, kind: output, shape index: {}]  }
   0x1   :  { %v36_v0 = vld [vmem:[%s496_s1 + $0x8] sm:$0xff]  ;;  %v35_v1 = vld [vmem:[%s496_s1] sm:$0xff] }
   0x2   :  { %80 = vmatpush.msra.mxu0 %v36_v0  ;;  %v27_v2 = vld [vmem:[%s495_s0] sm:$0xff]  ;;  %320 = vmatpush.msra.mxu3 %v36_v0 }
   0x4   :  { %81 = vmatpush.msra.mxu0 %v35_v1  ;;  %321 = vmatpush.msra.mxu3 %v35_v1 }
   0x5   :  { %12 = vsyncpa [#allocation3], 0  ;;  %296 = vmatmul.msk.f32.vlgmr.msra.gmra.mxu0 %vm41_vm0, %v27_v2  ;;  %v28_v3 = vld [vmem:[%s495_s0 + $0x8] sm:$0xff]  ;;  %v29_v4 = vld [vmem:[%s495_s0 + $0x10] sm:$0xff]  ;;  %vm123_vm1 = vcmask 261120   ;;  %s284_s16 = sshll.u32 %s502_s7, 4  ;;  %s285_s16 = int_to_ptr.hbm [resolvable:$true] %s284_s16 }
   0x6   :  { %v34_v5 = vld [vmem:[%s495_s0 + $0x38] sm:$0xff]  ;;  %v31_v8 = vld [vmem:[%s495_s0 + $0x20] sm:$0xff]  ;;  %v32_v9 = vld [vmem:[%s495_s0 + $0x28] sm:$0xff]  ;;  %s363_s17 = smov 128   ;;  %s364_s18 = smov 8  }
   0x7   :  { %v118_v6 = vld [vmem:[%s498_s3 + $0x18] sm:$0xff]  ;;  %303 = vmatmul.msk.f32.vlgmr.msra.gmra.mxu3 %vm41_vm0, %v34_v5  ;;  %v33_v10 = vld [vmem:[%s495_s0 + $0x30] sm:$0xff]  ;;  %v116_v12 = vld [vmem:[%s498_s3 + $0x8] sm:$0xff] }
   0x8   :  { %160 = vmatpush.msra.mxu1 %v118_v6  ;;  %322 = vmatpush.msrb.mxu3 %v118_v6  ;;  %v30_v7 = vld [vmem:[%s495_s0 + $0x18] sm:$0xff]  ;;  %v117_v11 = vld [vmem:[%s498_s3 + $0x10] sm:$0xff]  ;;  %v115_v13 = vld [vmem:[%s498_s3] sm:$0xff] }
   0x9   :  { %v333_v14 = vld [vmem:[%s497_s2] ss:$0 sm:$0xff]  ;;  %v200_v27 = vld [vmem:[%s500_s5 + $0x18] sm:$0xff]  ;;  %v199_v40 = vld [vmem:[%s500_s5 + $0x10] sm:$0xff] }
   0xa   :  { %161 = vmatpush.msra.mxu1 %v117_v11  ;;  %323 = vmatpush.msrb.mxu3 %v117_v11  ;;  %v198_v41 = vld [vmem:[%s500_s5 + $0x8] sm:$0xff]  ;;  %v197_v42 = vld [vmem:[%s500_s5] sm:$0xff] }
   0xb   :  { %241 = vmatpush.msra.mxu2 %v200_v27  ;;  %v334_v43 = vld [vmem:[%s499_s4] ss:$0 sm:$0xff] }
   0xc   :  { %162 = vmatpush.msra.mxu1 %v116_v12  ;;  %324 = vmatpush.msrb.mxu3 %v116_v12 }
   0xd   :  { %297 = vmatmul.msk.f32.gmra.mxu0 %vm41_vm0, %v28_v3  ;;  %242 = vmatpush.msra.mxu2 %v199_v40 }
   0xe   :  { %163 = vmatpush.msra.mxu1 %v115_v13  ;;  %325 = vmatpush.msrb.mxu3 %v115_v13 }
   0xf   :  { %243 = vmatpush.msra.mxu2 %v198_v41 }
  0x10   :  { %326 = vmatpush.msra.mxu3 %v200_v27 }
  0x11   :  { %244 = vmatpush.msra.mxu2 %v197_v42 }
  0x12   :  { %327 = vmatpush.msra.mxu3 %v199_v40 }
  0x14   :  { %328 = vmatpush.msra.mxu3 %v198_v41 }
  0x15   :  { %298 = vmatmul.msk.f32.gmra.mxu0 %vm41_vm0, %v29_v4  ;;  %v335_v4 = vld [vmem:[%s501_s6] ss:$0 sm:$0xff]  ;;  %s362_s6 = smov [#allocation2]  }
  0x16   :  { %329 = vmatpush.msra.mxu3 %v197_v42  ;;  %s282_s13 = sshll.u32 %s362_s6, 4  ;;  %s283_s13 = int_to_ptr.vmem [resolvable:$true] %s282_s13 }
  0x1d   :  { %299 = vmatmul.msk.f32.gmra.mxu0 %vm41_vm0, %v30_v7 }
  0x25   :  { %300 = vmatmul.msk.f32.gmra.mxu0 %vm41_vm0, %v31_v8 }
  0x2d   :  { %301 = vmatmul.msk.f32.gmra.mxu0 %vm41_vm0, %v32_v9 }
  0x35   :  { %302 = vmatmul.msk.f32.gmra.mxu0 %vm41_vm0, %v33_v10 }
  0x82   :  { %v83_v15 = vpop.f32.mrf.mxu0 }
  0x83   :  { %v84_v16 = vadd.f32 %v333_v14, %v83_v15 }
  0x85   :  { %v107_v17 = vmax.f32 %v84_v16, 0.0 }
  0x87   :  { %304 = vmatmul.msk.f32.vlgmr.msra.gmra.mxu1 %vm123_vm1, %v107_v17 }
  0x8a   :  { %v86_v18 = vpop.f32.mrf.mxu0  ;;  %v104_v36 = vpop.f32.mrf.mxu3 }
  0x8b   :  { %v87_v19 = vadd.f32 %v333_v14, %v86_v18  ;;  %v105_v38 = vadd.f32 %v333_v14, %v104_v36 }
  0x8d   :  { %v108_v20 = vmax.f32 %v87_v19, 0.0  ;;  %v114_v39 = vmax.f32 %v105_v38, 0.0 }
  0x8f   :  { %305 = vmatmul.msk.f32.gmra.mxu1 %vm123_vm1, %v108_v20 }
  0x92   :  { %v89_v21 = vpop.f32.mrf.mxu0 }
  0x93   :  { %v90_v22 = vadd.f32 %v333_v14, %v89_v21 }
  0x95   :  { %v109_v23 = vmax.f32 %v90_v22, 0.0 }
  0x97   :  { %306 = vmatmul.msk.f32.gmra.mxu1 %vm123_vm1, %v109_v23 }
  0x9a   :  { %v92_v24 = vpop.f32.mrf.mxu0 }
  0x9b   :  { %v93_v25 = vadd.f32 %v333_v14, %v92_v24 }
  0x9d   :  { %v110_v26 = vmax.f32 %v93_v25, 0.0 }
  0x9f   :  { %307 = vmatmul.msk.f32.gmra.mxu1 %vm123_vm1, %v110_v26 }
  0xa2   :  { %v95_v28 = vpop.f32.mrf.mxu0 }
  0xa3   :  { %v96_v29 = vadd.f32 %v333_v14, %v95_v28 }
  0xa5   :  { %v111_v30 = vmax.f32 %v96_v29, 0.0 }
  0xa7   :  { %308 = vmatmul.msk.f32.gmra.mxu1 %vm123_vm1, %v111_v30 }
  0xaa   :  { %v98_v31 = vpop.f32.mrf.mxu0 }
  0xab   :  { %v99_v32 = vadd.f32 %v333_v14, %v98_v31 }
  0xad   :  { %v112_v33 = vmax.f32 %v99_v32, 0.0 }
  0xaf   :  { %309 = vmatmul.msk.f32.gmra.mxu1 %vm123_vm1, %v112_v33 }
  0xb2   :  { %v101_v34 = vpop.f32.mrf.mxu0 }
  0xb3   :  { %v102_v35 = vadd.f32 %v333_v14, %v101_v34 }
  0xb5   :  { %v113_v37 = vmax.f32 %v102_v35, 0.0 }
  0xb7   :  { %310 = vmatmul.msk.f32.vlgmr.msrb.gmra.mxu3 %vm123_vm1, %v113_v37 }
  0xbf   :  { %311 = vmatmul.msk.f32.gmra.mxu3 %vm123_vm1, %v114_v39 }
 0x104   :  { %v165_v44 = vpop.f32.mrf.mxu1 }
 0x105   :  { %v166_v45 = vadd.f32 %v334_v43, %v165_v44 }
 0x107   :  { %v189_v46 = vmax.f32 %v166_v45, 0.0 }
 0x109   :  { %312 = vmatmul.msk.f32.vlgmr.msra.gmra.mxu2 %vm123_vm1, %v189_v46 }
 0x10c   :  { %v168_v47 = vpop.f32.mrf.mxu1 }
 0x10d   :  { %v169_v48 = vadd.f32 %v334_v43, %v168_v47 }
 0x10f   :  { %v190_v49 = vmax.f32 %v169_v48, 0.0 }
 0x111   :  { %313 = vmatmul.msk.f32.gmra.mxu2 %vm123_vm1, %v190_v49 }
 0x114   :  { %v171_v50 = vpop.f32.mrf.mxu1 }
 0x115   :  { %v172_v51 = vadd.f32 %v334_v43, %v171_v50 }
 0x117   :  { %v191_v52 = vmax.f32 %v172_v51, 0.0 }
 0x119   :  { %314 = vmatmul.msk.f32.gmra.mxu2 %vm123_vm1, %v191_v52 }
 0x11c   :  { %v174_v53 = vpop.f32.mrf.mxu1 }
 0x11d   :  { %v175_v54 = vadd.f32 %v334_v43, %v174_v53 }
 0x11f   :  { %v192_v55 = vmax.f32 %v175_v54, 0.0 }
 0x121   :  { %315 = vmatmul.msk.f32.gmra.mxu2 %vm123_vm1, %v192_v55 }
 0x124   :  { %v177_v56 = vpop.f32.mrf.mxu1 }
 0x125   :  { %v178_v57 = vadd.f32 %v334_v43, %v177_v56 }
 0x127   :  { %v193_v58 = vmax.f32 %v178_v57, 0.0 }
 0x129   :  { %316 = vmatmul.msk.f32.gmra.mxu2 %vm123_vm1, %v193_v58 }
 0x12c   :  { %v180_v59 = vpop.f32.mrf.mxu1 }
 0x12d   :  { %v181_v60 = vadd.f32 %v334_v43, %v180_v59 }
 0x12f   :  { %v194_v61 = vmax.f32 %v181_v60, 0.0 }
 0x131   :  { %317 = vmatmul.msk.f32.gmra.mxu2 %vm123_vm1, %v194_v61 }
 0x13a   :  { %v183_v62 = vpop.f32.mrf.mxu3 }
 0x13b   :  { %v184_v63 = vadd.f32 %v334_v43, %v183_v62 }
 0x13d   :  { %v195_v0 = vmax.f32 %v184_v63, 0.0 }
 0x13f   :  { %318 = vmatmul.msk.f32.vlgmr.msra.gmra.mxu3 %vm123_vm1, %v195_v0 }
 0x142   :  { %v186_v1 = vpop.f32.mrf.mxu3 }
 0x143   :  { %v187_v2 = vadd.f32 %v334_v43, %v186_v1 }
 0x145   :  { %v196_v3 = vmax.f32 %v187_v2, 0.0 }
 0x147   :  { %319 = vmatmul.msk.f32.gmra.mxu3 %vm123_vm1, %v196_v3 }
 0x18c   :  { %v246_v5 = vpop.f32.mrf.mxu2 }
 0x18d   :  { %v247_v6 = vadd.f32 %v335_v4, %v246_v5 }
 0x18f   :  { %270 = vst [vmem:[#allocation2] sm:$0xff] %v247_v6 }
 0x194   :  { %v249_v7 = vpop.f32.mrf.mxu2 }
 0x195   :  { %v250_v8 = vadd.f32 %v335_v4, %v249_v7 }
 0x197   :  { %271 = vst [vmem:[#allocation2 + $0x8] sm:$0xff] %v250_v8 }
 0x19c   :  { %v252_v9 = vpop.f32.mrf.mxu2 }
 0x19d   :  { %v253_v10 = vadd.f32 %v335_v4, %v252_v9 }
 0x19f   :  { %272 = vst [vmem:[#allocation2 + $0x10] sm:$0xff] %v253_v10 }
 0x1a4   :  { %v255_v11 = vpop.f32.mrf.mxu2 }
 0x1a5   :  { %v256_v12 = vadd.f32 %v335_v4, %v255_v11 }
 0x1a7   :  { %273 = vst [vmem:[#allocation2 + $0x18] sm:$0xff] %v256_v12 }
 0x1ac   :  { %v258_v13 = vpop.f32.mrf.mxu2 }
 0x1ad   :  { %v259_v14 = vadd.f32 %v335_v4, %v258_v13 }
 0x1af   :  { %274 = vst [vmem:[#allocation2 + $0x20] sm:$0xff] %v259_v14 }
 0x1b4   :  { %v261_v15 = vpop.f32.mrf.mxu2 }
 0x1b5   :  { %v262_v16 = vadd.f32 %v335_v4, %v261_v15 }
 0x1b7   :  { %275 = vst [vmem:[#allocation2 + $0x28] sm:$0xff] %v262_v16 }
 0x1c2   :  { %v264_v17 = vpop.f32.mrf.mxu3 }
 0x1c3   :  { %v265_v18 = vadd.f32 %v335_v4, %v264_v17 }
 0x1c5   :  { %276 = vst [vmem:[#allocation2 + $0x30] sm:$0xff] %v265_v18 }
 0x1ca   :  { %v267_v19 = vpop.f32.mrf.mxu3 }
 0x1cb   :  { %v268_v20 = vadd.f32 %v335_v4, %v267_v19 }
 0x1cd   :  { %277 = vst [vmem:[#allocation2 + $0x38] sm:$0xff] %v268_v20 }
 0x1ce   :  { %290 = dma.vmem_to_hbm [thread:$0]  %s283_s13, 1024, %s285_s16, [#allocation3], %s363_s17, %s363_s17, %s364_s18  }
 0x1cf   :  { %360 = dma.done.wait [#allocation3], 1024  }
 0x1d0   :  { %361 = vsyncadd [#allocation3], 4294966272 }
 0x1d1   :  { %295 = vsyncpa [#allocation3], 1 }

</bundles_post_ra>
